<compile_context>
chip_gen: v7x
topology: tpu7x:2x2x1
jax: 0.10.0
libtpu: 0.0.40
codegen_flags: <defaults>
</compile_context>

<pallas_src>
import jax
import jax.numpy as jnp
from jax.experimental import pallas as pl
from jax.experimental.pallas import tpu as pltpu


def _scale_bcast_kernel(logstd_ref, scale_ref):
    # row = exp(clamp(0 + logstd_bias, min=-2.5)), computed in f32.
    row = jnp.exp(jnp.maximum(logstd_ref[...].astype(jnp.float32),
                              jnp.float32(-2.5)))          # (1, N) f32
    # Broadcast across the sublane (batch-tile) dim and cast only at the store.
    scale_ref[...] = jnp.broadcast_to(row, scale_ref.shape).astype(scale_ref.dtype)


def _choose_tile_b(B, max_tile=512):
    """Largest B tile <= max_tile that is legal: either the full dim, or a
    multiple of 8 sublanes that divides B."""
    if B <= max_tile:
        return B
    tb = max_tile - (max_tile % 8)
    while tb >= 8:
        if B % tb == 0:
            return tb
        tb -= 8
    return B


def diag_gaussian_forward(action_mean, logstd_bias):
    """Returns (loc, scale) of the FixedNormal produced by DiagGaussian.forward."""
    B, N = action_mean.shape
    out_dtype = action_mean.dtype
    logstd_2d = logstd_bias.reshape(1, N).astype(jnp.float32)

    tb = _choose_tile_b(B)
    nb = B // tb

    if nb == 1:
        # Single whole-array block: no grid, no pipeline setup.
        scale = pl.pallas_call(
            _scale_bcast_kernel,
            out_shape=jax.ShapeDtypeStruct((B, N), out_dtype),
        )(logstd_2d)
    else:
        # Tile over B; each step re-reads the tiny (1, N) row and writes a
        # lane-dense (tb, N) slab.  B axis is embarrassingly parallel.
        scale = pl.pallas_call(
            _scale_bcast_kernel,
            out_shape=jax.ShapeDtypeStruct((B, N), out_dtype),
            grid=(nb,),
            in_specs=[pl.BlockSpec((1, N), lambda i: (0, 0))],
            out_specs=pl.BlockSpec((tb, N), lambda i: (i, 0)),
            compiler_params=pltpu.CompilerParams(
                dimension_semantics=("parallel",)),
        )(logstd_2d)

    # loc is a pure pass-through of action_mean.
    return action_mean, scale


if __name__ == "__main__":
    B, N = 8, 16  # batch, num_outputs (small, consistent with the module)

    key = jax.random.PRNGKey(0)
    k_mean, k_logstd = jax.random.split(key)
    action_mean = jax.random.normal(k_mean, (B, N), dtype=jnp.float32)

    # DiagGaussian.__init__ starts the logstd bias at zeros; perturb it here
    # (including values below -2.5) so both the exp and the clamp are exercised.
    logstd_bias = jax.random.normal(k_logstd, (N,), dtype=jnp.float32) * 2.0

    loc, scale = diag_gaussian_forward(action_mean, logstd_bias)
    jax.block_until_ready((loc, scale))

    # Reference check (plain JAX) of the forward semantics.
    ref_scale = jnp.broadcast_to(
        jnp.exp(jnp.maximum(logstd_bias.reshape(1, N), -2.5)), (B, N))
    assert jnp.allclose(loc, action_mean, atol=1e-6)
    assert jnp.allclose(scale, ref_scale, atol=1e-6)

    # Default (zero-initialized) parameter state of the module.
    loc0, scale0 = diag_gaussian_forward(action_mean, jnp.zeros((N,), jnp.float32))
    jax.block_until_ready((loc0, scale0))
    assert jnp.allclose(loc0, action_mean, atol=1e-6)
    assert jnp.allclose(scale0, jnp.ones((B, N), jnp.float32), atol=1e-6)

    # Exercise the tiled (grid) broadcast-write path with a larger batch.
    B2 = 1024
    action_mean2 = jax.random.normal(k_mean, (B2, N), dtype=jnp.float32)
    loc2, scale2 = diag_gaussian_forward(action_mean2, logstd_bias)
    jax.block_until_ready((loc2, scale2))
    ref_scale2 = jnp.broadcast_to(
        jnp.exp(jnp.maximum(logstd_bias.reshape(1, N), -2.5)), (B2, N))
    assert jnp.allclose(loc2, action_mean2, atol=1e-6)
    assert jnp.allclose(scale2, ref_scale2, atol=1e-6)

    print("KERNEL_OK")
</pallas_src>

<mosaic_0001>
module attributes {stable_mosaic.version = 11 : i64} {
  func.func @_scale_bcast_kernel(%arg0: memref<1x16xf32, #tpu.memory_space<vmem>>, %arg1: memref<8x16xf32, #tpu.memory_space<vmem>>) attributes {dimension_semantics = [], scalar_prefetch = 0 : i64, scratch_operands = 0 : i64, tpu.core_type = #tpu.core_type<tc>} {
    %c0 = arith.constant 0 : index
    %c0_0 = arith.constant 0 : index
    %0 = vector.load %arg0[%c0, %c0_0] : memref<1x16xf32, #tpu.memory_space<vmem>>, vector<1x16xf32>
    %cst = arith.constant -2.500000e+00 : f32
    %1 = vector.broadcast %cst : f32 to vector<1x16xf32>
    %2 = arith.maximumf %0, %1 : vector<1x16xf32>
    %3 = math.exp %2 : vector<1x16xf32>
    %4 = vector.shape_cast %3 : vector<1x16xf32> to vector<1x16xf32>
    %5 = vector.broadcast %4 : vector<1x16xf32> to vector<8x16xf32>
    %c0_1 = arith.constant 0 : index
    %c0_2 = arith.constant 0 : index
    %6 = vector.load %arg1[%c0_1, %c0_2] : memref<8x16xf32, #tpu.memory_space<vmem>>, vector<8x16xf32>
    tpu.vector_store %arg1[%c0_1, %c0_2], %5 {strides = array<i32>} : memref<8x16xf32, #tpu.memory_space<vmem>>, vector<8x16xf32>,
    return
  }
}

</mosaic_0001>

<bundles_post_ra>
// kernel: tpu_custom_call.1
= control target key start
LH: loop header
LB: loop body
LE: loop exit
PB: predicated region body
PF: predicated region fallthrough
CT: control target
= control target key end

     0   :  { %6 = vsyncpa [#allocation3], 0  ;;  %s136_s0 = inlined_call_operand.hbm [shape: f32[1,16], index: 0, kind: input, shape index: {}]   ;;  %s137_s1 = inlined_call_operand.hbm [shape: f32[8,16], index: 1, kind: output, shape index: {}]  }
   0x1   :  { %7 = vsyncpa [#allocation4], 0  ;;  %s100_s6 = smov [#allocation2]   ;;  %s52_s10 = scalar_lea.hbm %s136_s0, 16 }
   0x2   :  { %s14_s7 = sshll.u32 %s100_s6, 4  ;;  %p53_p0 = scmp.ne.s32.totalorder %s136_s0, %s52_s10  ;;  %s15_s7 = int_to_ptr.vmem [resolvable:$true] %s14_s7 }
   0x3   :  { %p56_p1 = scmp.lt.u32.totalorder %s52_s10, %s136_s0 }
   0x5   :  { %p58_p2 = pnand %p56_p1, %p53_p0 }
   0x7   :  { %61 = shalt.err (!%p58_p2)
}
   0x8   :  { %s62_s15 = scalar_lea.vmem %s15_s7, 16  ;;  %s66_s16 = scalar_lea.vmem %s15_s7, 32 }
   0x9   :  { %p63_p3 = scmp.ne.s32.totalorder %s15_s7, %s62_s15  ;;  %p67_p4 = scmp.lt.s32.totalorder %s15_s7, %s15_s7 }
   0xa   :  { %p68_p5 = scmp.lt.s32.totalorder %s66_s16, %s62_s15 }
   0xc   :  { %p69_p6 = por %p68_p5, %p67_p4 }
   0xe   :  { %p70_p7 = pnand %p69_p6, %p63_p3 }
  0x10   :  { %73 = shalt.err (!%p70_p7)
}
  0x11   :  { %17 = dma.hbm_to_vmem [thread:$0]  %s136_s0, 16, %s15_s7, [#allocation3]  }
  0x12   :  { %96 = dma.done.wait [#allocation3], 16  }
  0x13   :  { %97 = vsyncadd [#allocation3], 4294967280  ;;  %v21_v0 = vld [vmem:[#allocation2] sm:$0x1]  ;;  %v26_v3 = vlaneseq  ;;  %s101_s19 = smov [#allocation5]   ;;  %vm31_vm0 = vcmask 130048  }
  0x14   :  { %v22_v1 = vmax.f32 %v21_v0, -2.5  ;;  %s39_s20 = sshll.u32 %s101_s19, 4  ;;  %s40_s20 = int_to_ptr.vmem [resolvable:$true] %s39_s20 }
  0x15   :  { %v27_v4 = vshrl.u32 %v26_v3, 7  ;;  %s74_s21 = scalar_lea.vmem %s40_s20, 128  ;;  %p79_p9 = scmp.lt.s32.totalorder %s40_s20, %s40_s20 }
  0x16   :  { %v23_v2 = vmul.f32 1.442695, %v22_v1  ;;  %p75_p8 = scmp.ne.s32.totalorder %s40_s20, %s74_s21  ;;  %p80_p10 = scmp.lt.s32.totalorder %s74_s21, %s74_s21 }
  0x17   :  { %v28_v5 = vsub.s32 0, %v27_v4 }
  0x18   :  { %50 = vpow2.f32 %v23_v2  ;;  %p81_p11 = por %p80_p10, %p79_p9 }
  0x1a   :  { %p82_p12 = pnand %p81_p11, %p75_p8 }
  0x22   :  { %v51_v6 = vpop.eup %50 }
  0x23   :  { %v29_v7 = vrot.slane %v51_v6, %v28_v5 }
  0x25   :  { %32 = vst.msk [vmem:[#allocation5] sm:$0xff] %vm31_vm0, %v29_v7 }
  0x26   :  { %85 = shalt.err (!%p82_p12)
}
  0x27   :  { %s86_s23 = scalar_lea.hbm %s137_s1, 128 }
  0x28   :  { %p87_p13 = scmp.ne.s32.totalorder %s137_s1, %s86_s23  ;;  %p90_p0 = scmp.lt.u32.totalorder %s86_s23, %s137_s1 }
  0x2a   :  { %p92_p1 = pnand %p90_p0, %p87_p13 }
  0x2c   :  { %95 = shalt.err (!%p92_p1)
}
  0x2d   :  { %42 = dma.vmem_to_hbm [thread:$0]  %s40_s20, 128, %s137_s1, [#allocation4]  }
  0x2e   :  { %98 = dma.done.wait [#allocation4], 128  }
  0x2f   :  { %99 = vsyncadd [#allocation4], 4294967168 }
  0x30   :  { %46 = vsyncpa [#allocation3], 1 }
  0x31   :  { %47 = vsyncpa [#allocation4], 1 }

</bundles_post_ra>
